<compile_context>
chip_gen: v7x
topology: tpu7x:2x2x1
jax: 0.10.0
libtpu: 0.0.40
codegen_flags: <defaults>
</compile_context>

<pallas_src>
import functools

import jax
import jax.numpy as jnp
from jax.experimental import pallas as pl
from jax.experimental.pallas import tpu as pltpu

_EPS = 1e-6  # F.pairwise_distance default eps (added to the elementwise difference)


def _contrastive_loss_kernel(o1_ref, o2_ref, label_ref, out_ref, *,
                             margin, batch, tile_b, mask_rows):
    # (TB, D) feature blocks -> one partial loss sum, broadcast into an
    # aligned (1, 8, 128) output block (single unmasked vector store).
    o1 = o1_ref[...].astype(jnp.float32)
    o2 = o2_ref[...].astype(jnp.float32)
    lab = label_ref[...].astype(jnp.float32)                   # (TB, 1)

    diff = o1 - o2 + _EPS                                      # (TB, D)
    dist_sq = jnp.sum(diff * diff, axis=-1, keepdims=True)     # (TB, 1) lane reduce
    dist = jnp.sqrt(dist_sq)
    hinge = jnp.maximum(margin - dist, 0.0)
    per = (1.0 - lab) * dist_sq + lab * (hinge * hinge)        # (TB, 1)

    if mask_rows:
        # Ragged last tile: rows >= batch are boundary-block garbage (possibly
        # NaN); jnp.where selects, so they are cleanly zeroed before the sum.
        rows = pl.program_id(0) * tile_b + jax.lax.broadcasted_iota(
            jnp.int32, per.shape, 0)
        per = jnp.where(rows < batch, per, 0.0)

    partial = jnp.sum(per)                                     # scalar
    out_ref[...] = jnp.zeros(out_ref.shape, jnp.float32) + partial


def _round_up(x, m):
    return ((x + m - 1) // m) * m


def _vmem_capacity_bytes():
    try:
        info = pltpu.get_tpu_info()
        cap = getattr(info, "vmem_capacity_bytes", None)
        if cap:
            return int(cap)
    except Exception:
        pass
    return 64 * 1024 * 1024  # conservative fallback (v7x per-TC VMEM)


def _sublane_align(*dtypes):
    # Sub-32-bit dtypes pack along sublanes; keep the row tile a multiple of
    # the packed sublane count (8 for f32, 16 for bf16, 32 for int8/fp8).
    align = 8
    for dt in dtypes:
        isz = max(jnp.dtype(dt).itemsize, 1)
        align = max(align, 32 // isz)
    return align


def _choose_tile_b(batch, feat, vmem_cap, align, tile_b=None):
    b_al = _round_up(batch, align)
    if tile_b is not None:
        tb = max(align, _round_up(int(tile_b), align))
        return min(tb, b_al)

    # ~30% of VMEM for the 2 inputs x 2 pipeline buffers; row counted at f32 +
    # lane-padded width so bf16->f32 upcast temporaries are covered too.
    budget = (3 * vmem_cap) // 10
    row_bytes = 4 * _round_up(feat, 128)
    tb = budget // (4 * row_bytes)
    tb = int(max(align, min(tb, 32768)))
    tb = (tb // align) * align

    if b_al <= tb:
        if batch >= 1024:
            # Keep >=2 tiles so the "parallel" axis can split across v7x's two
            # TensorCores (no-op on v5e/v6e).
            tb = _round_up((b_al + 1) // 2, align)
        else:
            tb = b_al
    return tb


def contrastive_loss(output1, output2, label, margin=2.0, *, tile_b=None):
    """Pallas TPU ContrastiveLoss.forward.

    output1, output2: (B, D) float arrays (f32 or bf16)
    label:            (B,) or (B, 1) in {0, 1}
    returns: scalar f32 loss
    """
    B, D = output1.shape
    assert output2.shape == (B, D)
    label = jnp.asarray(label)
    if label.dtype == jnp.bool_:
        label = label.astype(jnp.float32)
    label = jnp.reshape(label, (B, 1))

    cap = _vmem_capacity_bytes()
    align = _sublane_align(output1.dtype, output2.dtype, label.dtype)
    tb = _choose_tile_b(B, D, cap, align, tile_b)
    n_tiles = -(-B // tb)
    mask_rows = (B % tb) != 0
    vmem_limit = int(max(32 * 1024 * 1024, (7 * cap) // 10))

    kernel = functools.partial(
        _contrastive_loss_kernel,
        margin=float(margin), batch=int(B), tile_b=int(tb),
        mask_rows=bool(mask_rows))

    partials = pl.pallas_call(
        kernel,
        out_shape=jax.ShapeDtypeStruct((n_tiles, 8, 128), jnp.float32),
        grid=(n_tiles,),
        in_specs=[
            pl.BlockSpec((tb, D), lambda i: (i, 0)),
            pl.BlockSpec((tb, D), lambda i: (i, 0)),
            pl.BlockSpec((tb, 1), lambda i: (i, 0)),
        ],
        out_specs=pl.BlockSpec((1, 8, 128), lambda i: (i, 0, 0)),
        compiler_params=pltpu.CompilerParams(
            dimension_semantics=("parallel",),
            vmem_limit_bytes=vmem_limit,
        ),
    )(output1, output2, label)

    # Tiny epilogue: one value per tile, already masked in-kernel.
    return jnp.sum(partials[:, 0, 0]) / B


def _reference_loss(output1, output2, label, margin=2.0):
    # Pure-JAX reference mirroring the PyTorch semantics.
    o1 = output1.astype(jnp.float32)
    o2 = output2.astype(jnp.float32)
    lab = jnp.reshape(label, (-1, 1)).astype(jnp.float32)
    diff = o1 - o2 + _EPS
    dist = jnp.sqrt(jnp.sum(diff * diff, axis=-1, keepdims=True))
    per = (1.0 - lab) * dist**2 + lab * jnp.maximum(margin - dist, 0.0) ** 2
    return jnp.mean(per)


if __name__ == "__main__":
    key = jax.random.PRNGKey(0)
    k1, k2, k3 = jax.random.split(key, 3)

    # 1) Small Siamese-head embedding batch (single-tile path).
    B, D = 8, 32
    o1 = jax.random.normal(k1, (B, D), dtype=jnp.float32)
    o2 = jax.random.normal(k2, (B, D), dtype=jnp.float32)
    lab = jax.random.bernoulli(k3, p=0.5, shape=(B, 1)).astype(jnp.float32)

    loss = jax.block_until_ready(contrastive_loss(o1, o2, lab, margin=2.0))
    ref = _reference_loss(o1, o2, lab, margin=2.0)
    assert jnp.allclose(loss, ref, rtol=1e-5, atol=1e-5), (loss, ref)

    # 2) Multi-tile path with a ragged last tile (no padding; in-kernel masking).
    B2, D2 = 20, 32
    o1b = jax.random.normal(k1, (B2, D2), dtype=jnp.float32)
    o2b = jax.random.normal(k2, (B2, D2), dtype=jnp.float32)
    labb = jax.random.bernoulli(k3, p=0.5, shape=(B2, 1)).astype(jnp.float32)
    loss2 = jax.block_until_ready(
        contrastive_loss(o1b, o2b, labb, margin=2.0, tile_b=8))
    ref2 = _reference_loss(o1b, o2b, labb, margin=2.0)
    assert jnp.allclose(loss2, ref2, rtol=1e-5, atol=1e-5), (loss2, ref2)

    # 3) bf16 inputs at the HBM boundary (halves DMA bytes), f32 math in-kernel.
    o1c = o1.astype(jnp.bfloat16)
    o2c = o2.astype(jnp.bfloat16)
    loss3 = jax.block_until_ready(contrastive_loss(o1c, o2c, lab, margin=2.0))
    ref3 = _reference_loss(o1c, o2c, lab, margin=2.0)
    assert jnp.allclose(loss3, ref3, rtol=1e-4, atol=1e-4), (loss3, ref3)

    # 4) B >= 1024: auto-tiling keeps >=2 "parallel" tiles (v7x megacore path)
    #    with a ragged last tile handled by in-kernel masking.
    B4, D4 = 1029, 64
    k4, k5, k6 = jax.random.split(k3, 3)
    o1d = jax.random.normal(k4, (B4, D4), dtype=jnp.float32)
    o2d = jax.random.normal(k5, (B4, D4), dtype=jnp.float32)
    labd = jax.random.bernoulli(k6, p=0.5, shape=(B4, 1)).astype(jnp.float32)
    loss4 = jax.block_until_ready(contrastive_loss(o1d, o2d, labd, margin=2.0))
    ref4 = _reference_loss(o1d, o2d, labd, margin=2.0)
    assert jnp.allclose(loss4, ref4, rtol=1e-4, atol=1e-4), (loss4, ref4)

    print("KERNEL_OK")
</pallas_src>

<mosaic_0001>
module attributes {stable_mosaic.version = 11 : i64} {
  func.func @_contrastive_loss_kernel(%arg0: i32, %arg1: memref<8x32xf32, #tpu.memory_space<vmem>>, %arg2: memref<8x32xf32, #tpu.memory_space<vmem>>, %arg3: memref<8x1xf32, #tpu.memory_space<vmem>>, %arg4: memref<1x8x128xf32, #tpu.memory_space<vmem>>) attributes {dimension_semantics = [#tpu.dimension_semantics<parallel>], iteration_bounds = array<i64: 1>, scalar_prefetch = 0 : i64, scratch_operands = 0 : i64, tpu.core_type = #tpu.core_type<tc>, window_params = [{transform_indices = @transform_0, window_bounds = array<i64: 8, 32>}, {transform_indices = @transform_1, window_bounds = array<i64: 8, 32>}, {transform_indices = @transform_2, window_bounds = array<i64: 8, 1>}, {transform_indices = @transform_3, window_bounds = array<i64: 1, 8, 128>}]} {
    %c0 = arith.constant 0 : index
    %c0_0 = arith.constant 0 : index
    %0 = vector.load %arg1[%c0, %c0_0] : memref<8x32xf32, #tpu.memory_space<vmem>>, vector<8x32xf32>
    %c0_1 = arith.constant 0 : index
    %c0_2 = arith.constant 0 : index
    %1 = vector.load %arg2[%c0_1, %c0_2] : memref<8x32xf32, #tpu.memory_space<vmem>>, vector<8x32xf32>
    %c0_3 = arith.constant 0 : index
    %c0_4 = arith.constant 0 : index
    %2 = vector.load %arg3[%c0_3, %c0_4] : memref<8x1xf32, #tpu.memory_space<vmem>>, vector<8x1xf32>
    %3 = arith.subf %0, %1 : vector<8x32xf32>
    %cst = arith.constant 9.99999997E-7 : f32
    %4 = vector.broadcast %cst : f32 to vector<8x32xf32>
    %5 = arith.addf %3, %4 : vector<8x32xf32>
    %6 = arith.mulf %5, %5 : vector<8x32xf32>
    %cst_5 = arith.constant dense<0.000000e+00> : vector<8xf32>
    %7 = vector.multi_reduction <add>, %6, %cst_5 [1] : vector<8x32xf32> to vector<8xf32>
    %8 = vector.shape_cast %7 : vector<8xf32> to vector<8x1xf32>
    %9 = math.sqrt %8 : vector<8x1xf32>
    %cst_6 = arith.constant 2.000000e+00 : f32
    %10 = vector.broadcast %cst_6 : f32 to vector<8x1xf32>
    %11 = arith.subf %10, %9 : vector<8x1xf32>
    %cst_7 = arith.constant 0.000000e+00 : f32
    %12 = vector.broadcast %cst_7 : f32 to vector<8x1xf32>
    %13 = arith.maximumf %11, %12 : vector<8x1xf32>
    %cst_8 = arith.constant 1.000000e+00 : f32
    %14 = vector.broadcast %cst_8 : f32 to vector<8x1xf32>
    %15 = arith.subf %14, %2 : vector<8x1xf32>
    %16 = arith.mulf %15, %8 : vector<8x1xf32>
    %17 = arith.mulf %13, %13 : vector<8x1xf32>
    %18 = arith.mulf %2, %17 : vector<8x1xf32>
    %19 = arith.addf %16, %18 : vector<8x1xf32>
    %20 = vector.shape_cast %19 : vector<8x1xf32> to vector<1x8x1xf32>
    %cst_9 = arith.constant dense<0.000000e+00> : vector<1xf32>
    %21 = vector.multi_reduction <add>, %20, %cst_9 [1, 2] : vector<1x8x1xf32> to vector<1xf32>
    %22 = vector.shape_cast %21 : vector<1xf32> to vector<1x1x1xf32>
    %23 = vector.extract %22[0, 0, 0] : f32 from vector<1x1x1xf32>
    %cst_10 = arith.constant 0.000000e+00 : f32
    %24 = vector.broadcast %cst_10 : f32 to vector<1x8x128xf32>
    %25 = vector.broadcast %23 : f32 to vector<1x8x128xf32>
    %26 = arith.addf %24, %25 : vector<1x8x128xf32>
    %c0_11 = arith.constant 0 : index
    %c0_12 = arith.constant 0 : index
    %c0_13 = arith.constant 0 : index
    %27 = vector.load %arg4[%c0_11, %c0_12, %c0_13] : memref<1x8x128xf32, #tpu.memory_space<vmem>>, vector<1x8x128xf32>
    tpu.vector_store %arg4[%c0_11, %c0_12, %c0_13], %26 {strides = array<i32>} : memref<1x8x128xf32, #tpu.memory_space<vmem>>, vector<1x8x128xf32>,
    return
  }
  func.func @transform_0(%arg0: i32) -> (i32, i32) {
    %c0_i32 = arith.constant 0 : i32
    %c0_i32_0 = arith.constant 0 : i32
    return %arg0, %c0_i32 : i32, i32
  }
  func.func @transform_1(%arg0: i32) -> (i32, i32) {
    %c0_i32 = arith.constant 0 : i32
    %c0_i32_0 = arith.constant 0 : i32
    return %arg0, %c0_i32 : i32, i32
  }
  func.func @transform_2(%arg0: i32) -> (i32, i32) {
    %c0_i32 = arith.constant 0 : i32
    %c0_i32_0 = arith.constant 0 : i32
    return %arg0, %c0_i32 : i32, i32
  }
  func.func @transform_3(%arg0: i32) -> (i32, i32, i32) {
    %c0_i32 = arith.constant 0 : i32
    %c0_i32_0 = arith.constant 0 : i32
    %c0_i32_1 = arith.constant 0 : i32
    return %arg0, %c0_i32, %c0_i32_0 : i32, i32, i32
  }
}

</mosaic_0001>

<bundles_post_ra>
// kernel: tpu_custom_call.1
= control target key start
LH: loop header
LB: loop body
LE: loop exit
PB: predicated region body
PF: predicated region fallthrough
CT: control target
= control target key end

     0   :  { %8 = vsyncpa [#allocation3], 0  ;;  %s186_s0 = inlined_call_operand.vmem [shape: f32[8,32], index: 0, kind: input, shape index: {}]   ;;  %s187_s1 = inlined_call_operand.hbm [shape: f32[8,32], index: 1, kind: input, shape index: {}]   ;;  %s188_s2 = inlined_call_operand.vmem [shape: f32[8,1], index: 2, kind: input, shape index: {}]   ;;  %s189_s3 = inlined_call_operand.hbm [shape: f32[1,8,128], index: 3, kind: output, shape index: {}]  }
   0x1   :  { %9 = vsyncpa [#allocation4], 0  ;;  %s134_s12 = smov [#allocation2]   ;;  %s86_s16 = scalar_lea.hbm %s187_s1, 128 }
   0x2   :  { %s18_s13 = sshll.u32 %s134_s12, 4  ;;  %p87_p0 = scmp.ne.s32.totalorder %s187_s1, %s86_s16  ;;  %s19_s13 = int_to_ptr.vmem [resolvable:$true] %s18_s13 }
   0x3   :  { %p90_p1 = scmp.lt.u32.totalorder %s86_s16, %s187_s1 }
   0x5   :  { %p92_p2 = pnand %p90_p1, %p87_p0 }
   0x7   :  { %95 = shalt.err (!%p92_p2)
}
   0x8   :  { %s96_s21 = scalar_lea.vmem %s19_s13, 128  ;;  %p101_p4 = scmp.lt.s32.totalorder %s19_s13, %s19_s13 }
   0x9   :  { %p97_p3 = scmp.ne.s32.totalorder %s19_s13, %s96_s21  ;;  %p102_p5 = scmp.lt.s32.totalorder %s96_s21, %s96_s21 }
   0xb   :  { %p103_p6 = por %p102_p5, %p101_p4 }
   0xd   :  { %p104_p7 = pnand %p103_p6, %p97_p3 }
   0xf   :  { %107 = shalt.err (!%p104_p7)
}
  0x10   :  { %21 = dma.hbm_to_vmem [thread:$0]  %s187_s1, 128, %s19_s13, [#allocation3]  }
  0x11   :  { %130 = dma.done.wait [#allocation3], 128  }
  0x12   :  { %131 = vsyncadd [#allocation3], 4294967168  ;;  %v27_v0 = vld [vmem:[%s186_s0] sm:$0xff]  ;;  %vm33_vm0 = vcmask 261120   ;;  %vm51_vm3 = vcmask 7168   ;;  %s135_s0 = smov [#allocation5]  }
  0x13   :  { %v28_v1 = vld [vmem:[#allocation2] sm:$0xff] }
  0x14   :  { %v30_v2 = vsub.f32 %v27_v0, %v28_v1  ;;  %v29_v11 = vld [vmem:[%s188_s2] sm:$0xff]  ;;  %s71_s2 = sshll.u32 %s135_s0, 4  ;;  %s72_s2 = int_to_ptr.vmem [resolvable:$true] %s71_s2 }
  0x15   :  { %v46_v15 = vsub.f32 1.0, %v29_v11  ;;  %s108_s28 = scalar_lea.vmem %s72_s2, 128  ;;  %p113_p9 = scmp.lt.s32.totalorder %s72_s2, %s72_s2 }
  0x16   :  { %v31_v3 = vadd.f32 1e-06, %v30_v2  ;;  %p109_p8 = scmp.ne.s32.totalorder %s72_s2, %s108_s28  ;;  %p114_p10 = scmp.lt.s32.totalorder %s108_s28, %s108_s28 }
  0x18   :  { %v32_v4 = vmul.f32 %v31_v3, %v31_v3  ;;  %p115_p11 = por %p114_p10, %p113_p9 }
  0x1a   :  { %v34_v5 = vsel %vm33_vm0, %v32_v4, 0.0  ;;  %p116_p12 = pnand %p115_p11, %p109_p8 }
  0x1b   :  { %35 = vadd.xlane.f32.xlu0 %v34_v5 }
  0xa8   :  { %v36_v6 = vpop.xlane.xlu0 %35 }
  0xa9   :  { %84 = vrsqrt.f32 %v36_v6  ;;  %vm39_vm1 = vcmp.eq.f32.partialorder %v36_v6, inf  ;;  %v42_v9 = vand.u32 2147483648, %v36_v6  ;;  %vm41_vm2 = vcmp.eq.f32.partialorder %v36_v6, 0.0 }
  0xaa   :  { %v47_v17 = vmul.f32 %v46_v15, %v36_v6 }
  0xb3   :  { %v85_v7 = vpop.eup %84 }
  0xb4   :  { %v38_v8 = vmul.f32 %v85_v7, %v36_v6 }
  0xb6   :  { %v40_v10 = vsel %vm39_vm1, %v36_v6, %v38_v8 }
  0xb7   :  { %v43_v12 = vsel %vm41_vm2, %v42_v9, %v40_v10 }
  0xb8   :  { %v44_v13 = vsub.f32 2.0, %v43_v12 }
  0xba   :  { %v45_v14 = vmax.f32 %v44_v13, 0.0 }
  0xbc   :  { %v48_v16 = vmul.f32 %v45_v14, %v45_v14 }
  0xbe   :  { %v49_v18 = vmul.f32 %v48_v16, %v29_v11 }
  0xc0   :  { %v50_v19 = vadd.f32 %v49_v18, %v47_v17 }
  0xc2   :  { %v52_v20 = vsel %vm51_vm3, %v50_v19, 0.0 }
  0xc3   :  { %53 = vadd.xlane.f32.xlu0 %v52_v20 }
 0x150   :  { %v54_v21 = vpop.xlane.xlu0 %53 }
 0x151   :  { %v55_v22 = vrot.slane %v54_v21, 4 }
 0x153   :  { %v56_v23 = vadd.f32 %v55_v22, %v54_v21 }
 0x155   :  { %v57_v24 = vrot.slane %v56_v23, 2 }
 0x157   :  { %v58_v25 = vadd.f32 %v57_v24, %v56_v23 }
 0x159   :  { %v59_v26 = vrot.slane %v58_v25, 1 }
 0x15b   :  { %v60_v27 = vadd.f32 %v59_v26, %v58_v25 }
 0x15d   :  { %80 = vpush %v60_v27 }
 0x18e   :  { %s81_s27 = spop %80 }
 0x18f   :  { %v62_v28 = vstv %s81_s27 }
 0x190   :  { %64 = vst [vmem:[#allocation5] sm:$0xff] %v62_v28 }
 0x191   :  { %119 = shalt.err (!%p116_p12)
}
 0x192   :  { %s120_s4 = scalar_lea.hbm %s189_s3, 128 }
 0x193   :  { %p121_p13 = scmp.ne.s32.totalorder %s189_s3, %s120_s4  ;;  %p124_p0 = scmp.lt.u32.totalorder %s120_s4, %s189_s3 }
 0x195   :  { %p126_p1 = pnand %p124_p0, %p121_p13 }
 0x197   :  { %129 = shalt.err (!%p126_p1)
}
 0x198   :  { %74 = dma.vmem_to_hbm [thread:$0]  %s72_s2, 128, %s189_s3, [#allocation4]  }
 0x199   :  { %132 = dma.done.wait [#allocation4], 128  }
 0x19a   :  { %133 = vsyncadd [#allocation4], 4294967168 }
 0x19b   :  { %78 = vsyncpa [#allocation3], 1 }
 0x19c   :  { %79 = vsyncpa [#allocation4], 1 }

</bundles_post_ra>
